<compile_context>
chip_gen: v6e
topology: v6e:2x2x1
jax: 0.10.0
libtpu: 0.0.40
codegen_flags: <defaults>
</compile_context>

<pallas_src>
import itertools
import numpy as np
import jax
import jax.numpy as jnp
from jax.experimental import pallas as pl
from jax.experimental.pallas import tpu as pltpu

# ------------------------- model configuration -------------------------------
D_NUMERICAL = 3
CATEGORIES = [5, 7, 4, 6]
D_EMBED = 8
MLP_LAYERS = [64, 32]
FDIN_MLP_LAYERS = [32]
REDUCTION_RATIO = 3
SEIA_REDUCTION_RATIO = 3
N_CLASSES = 1
BN_EPS = 1e-5

BATCH = 16

NUM_FIELDS = D_NUMERICAL + len(CATEGORIES)          # F = 7
NUM_PAIRS = NUM_FIELDS * (NUM_FIELDS - 1) // 2      # P = 21
FD = NUM_FIELDS * D_EMBED                           # 56
PD = NUM_PAIRS * D_EMBED                            # 168
PDP = ((PD + 127) // 128) * 128                     # pair dim padded to lane tiles = 256
R_SE = max(1, NUM_FIELDS // REDUCTION_RATIO)        # 2
R_FIIN = max(1, NUM_PAIRS // SEIA_REDUCTION_RATIO)  # 7
PAIRS = list(itertools.combinations(range(NUM_FIELDS), 2))
H_FDIN = FDIN_MLP_LAYERS[0]
H0, H1 = MLP_LAYERS
OUT_PAD = 128                                       # lane-dense kernel output width


# ------------------------------ Pallas kernel --------------------------------
def fdiiin_kernel(x_ref,
                  w1f_ref, w2f_ref,                 # field SENet (pool/bcast folded)
                  wd0_ref, wd1_ref,                 # FDIN MLP (BN folded)
                  selij_ref,                        # pair gather, bilinear W folded left
                  w1p_ref, w2p_ref,                 # FIIN SENet (pool/bcast folded)
                  wm0_ref, wm1_ref, wm2_ref,        # final MLP (BN folded)
                  bias_ref,
                  out_ref):
    relu = lambda v: jnp.maximum(v, 0.0)
    bf16 = jnp.bfloat16

    def dot(a, b):  # bf16 MXU inputs, f32 accumulation
        return jnp.dot(a.astype(bf16), b.astype(bf16),
                       preferred_element_type=jnp.float32)

    bias = bias_ref[...]                              # (8, 128) f32
    x = x_ref[...]                                    # (BB, FD) f32
    xb = x.astype(bf16)                               # hoisted: reused by 3 matmuls
    n = x.shape[0]

    # ---- SENet over fields (mean pool + broadcast folded into the 2 FC weights)
    a_fd = relu(dot(relu(dot(xb, w1f_ref[...])), w2f_ref[...]))   # (BB, FD)
    dyn = x * a_fd

    # ---- FDIN MLP (BN folded into weights/bias) -------------------------------
    h = relu(dot(xb, wd0_ref[...]) + bias[0:1, :H_FDIN])
    stat = dot(h, wd1_ref[...]) + bias[1:2, :FD]      # (BB, FD)
    dual = dyn + stat

    # ---- Bilinear (per-pair weights folded into selij), both branches stacked -
    e2 = jnp.concatenate([xb, dual.astype(bf16)], axis=0)   # (2*BB, FD) bf16
    vij = dot(e2, selij_ref[...])                            # (2*BB, 2*PDP) f32
    bil = vij[:, :PDP] * vij[:, PDP:]                        # (2*BB, PDP)

    # ---- FIIN SENet (pool + broadcast folded) + residual ----------------------
    a_pd = relu(dot(relu(dot(bil, w1p_ref[...])), w2p_ref[...]))  # (2*BB, PDP)
    t2 = bil * a_pd + bil                                         # (2*BB, PDP) f32
    t2b = t2.astype(bf16)                                         # hoisted cast

    # ---- final MLP (concat folded into the two halves of wm0; BN folded) ------
    wm0 = wm0_ref[...]                                # (2*PDP, H0)
    h0 = relu(dot(t2b[:n], wm0[:PDP]) + dot(t2b[n:], wm0[PDP:]) + bias[2:3, :H0])
    h1 = relu(dot(h0, wm1_ref[...]) + bias[3:4, :H1])
    out_ref[...] = dot(h1, wm2_ref[...]) + bias[4:5, :]   # (BB, 128) lane-dense


def _choose_block(batch):
    """Row tile: single grid step for small batches; multiple-of-128 tiles (max
    512) only when the batch is large enough that each grid step / megacore
    shard still has >=128 rows to amortize the MXU weight pushes."""
    if batch <= 512:
        return batch
    for bb in (512, 256, 128):
        if batch % bb == 0:
            return bb
    return batch        # fallback: one full-batch step


def fdiiin_pallas(x_flat, params):
    b = x_flat.shape[0]
    bb = _choose_block(b)
    n_steps = b // bb
    in_specs = [pl.BlockSpec((bb, FD), lambda i: (i, 0))]
    in_specs += [pl.BlockSpec(p.shape, lambda i: (0, 0)) for p in params]
    dsem = ("parallel",) if n_steps > 1 else ("arbitrary",)
    out = pl.pallas_call(
        fdiiin_kernel,
        out_shape=jax.ShapeDtypeStruct((b, OUT_PAD), jnp.float32),
        grid=(n_steps,),
        in_specs=in_specs,
        out_specs=pl.BlockSpec((bb, OUT_PAD), lambda i: (i, 0)),
        compiler_params=pltpu.CompilerParams(dimension_semantics=dsem),
    )(x_flat, *params)
    out = out[:, :N_CLASSES]
    if N_CLASSES == 1:
        out = out[:, 0]                               # .squeeze(-1)
    return out


# --------------------------- parameter construction --------------------------
def make_params():
    key = jax.random.PRNGKey(0)
    ks = iter(jax.random.split(key, 32))
    rnd = lambda shape, s=0.1: (jax.random.normal(next(ks), shape) * s).astype(jnp.float32)

    p = {}
    # embeddings
    p["num_w"] = rnd((D_NUMERICAL, 1, D_EMBED))
    p["num_b"] = rnd((D_NUMERICAL, D_EMBED))
    p["cat_table"] = rnd((sum(CATEGORIES), D_EMBED))
    p["offsets"] = jnp.asarray(np.cumsum([0] + CATEGORIES[:-1]), dtype=jnp.int32)
    # SENet over fields
    p["wse1"] = rnd((NUM_FIELDS, R_SE))
    p["wse2"] = rnd((R_SE, NUM_FIELDS))
    # FDIN MLP
    p["wd0"] = rnd((FD, H_FDIN))
    p["bd0"] = rnd((1, H_FDIN))
    p["wd1"] = rnd((H_FDIN, FD))
    p["bd1"] = rnd((1, FD))
    # Bilinear per-pair weights ('field_interaction')
    p["wpair"] = rnd((NUM_PAIRS, D_EMBED, D_EMBED))
    # FIIN SENet
    p["wfi1"] = rnd((NUM_PAIRS, R_FIIN))
    p["wfi2"] = rnd((R_FIIN, NUM_PAIRS))
    # final MLP
    p["wm0"] = rnd((2 * PD, H0))
    p["bm0"] = rnd((1, H0))
    p["wm1"] = rnd((H0, H1))
    p["bm1"] = rnd((1, H1))
    p["wm2"] = rnd((H1, N_CLASSES))
    p["bm2"] = rnd((1, N_CLASSES))

    # BatchNorm1d at PyTorch init (eval mode): gamma=1, beta=0, mean=0, var=1.
    def bn_scale_shift(dim):
        gamma = jnp.ones((1, dim), jnp.float32)
        beta = jnp.zeros((1, dim), jnp.float32)
        mean = jnp.zeros((1, dim), jnp.float32)
        var = jnp.ones((1, dim), jnp.float32)
        scale = gamma / jnp.sqrt(var + BN_EPS)
        shift = beta - mean * scale
        return scale, shift

    p["sd0"], p["td0"] = bn_scale_shift(H_FDIN)
    p["sm0"], p["tm0"] = bn_scale_shift(H0)
    p["sm1"], p["tm1"] = bn_scale_shift(H1)
    return p


def kernel_params(p, w_dtype=jnp.bfloat16):
    """Assemble the padded, host-side-folded kernel parameter list (fixed order)."""
    f32 = np.float32
    D = D_EMBED
    inv_d = f32(1.0 / D)

    # field SENet: 1/D mean-pool folded into FC1, lane-broadcast folded into FC2
    # (exact: both folds commute with the elementwise ReLUs).
    w1f = np.repeat(np.asarray(p["wse1"], f32), D, axis=0) * inv_d      # (FD, R_SE)
    w2f = np.repeat(np.asarray(p["wse2"], f32), D, axis=1)              # (R_SE, FD)

    # FIIN SENet: same fold; padded pair rows/cols stay zero.
    w1p = np.zeros((PDP, R_FIIN), f32)
    w1p[:PD] = np.repeat(np.asarray(p["wfi1"], f32), D, axis=0) * inv_d
    w2p = np.zeros((R_FIIN, PDP), f32)
    w2p[:, :PD] = np.repeat(np.asarray(p["wfi2"], f32), D, axis=1)

    # pair-gather selector: per-pair bilinear weights folded into the v_i half,
    # identity gather for the v_j half; each half padded to PDP (128-aligned).
    selij = np.zeros((FD, 2 * PDP), f32)
    eye = np.eye(D, dtype=f32)
    wpair = np.asarray(p["wpair"], f32)
    for q, (i, j) in enumerate(PAIRS):
        selij[i * D:(i + 1) * D, q * D:(q + 1) * D] = wpair[q]
        selij[j * D:(j + 1) * D, PDP + q * D:PDP + (q + 1) * D] = eye

    # BN-folded linear layers (eval mode)
    wd0f = np.asarray(p["wd0"]) * np.asarray(p["sd0"])
    bd0f = np.asarray(p["bd0"]) * np.asarray(p["sd0"]) + np.asarray(p["td0"])
    wm0f = np.asarray(p["wm0"]) * np.asarray(p["sm0"])
    bm0f = np.asarray(p["bm0"]) * np.asarray(p["sm0"]) + np.asarray(p["tm0"])
    wm1f = np.asarray(p["wm1"]) * np.asarray(p["sm1"])
    bm1f = np.asarray(p["bm1"]) * np.asarray(p["sm1"]) + np.asarray(p["tm1"])

    # first MLP layer split into the two (padded) concat halves
    wm0p = np.zeros((2 * PDP, H0), f32)
    wm0p[:PD] = wm0f[:PD]
    wm0p[PDP:PDP + PD] = wm0f[PD:]

    # lane-dense final projection
    wm2p = np.zeros((H1, OUT_PAD), f32)
    wm2p[:, :N_CLASSES] = np.asarray(p["wm2"])

    # packed biases (f32; the elementwise chain stays f32)
    bias = np.zeros((8, 128), f32)
    bias[0, :H_FDIN] = bd0f[0]
    bias[1, :FD] = np.asarray(p["bd1"])[0]
    bias[2, :H0] = bm0f[0]
    bias[3, :H1] = bm1f[0]
    bias[4, :N_CLASSES] = np.asarray(p["bm2"])[0]

    w = lambda a: jnp.asarray(a, dtype=w_dtype)
    return [
        w(w1f), w(w2f),
        w(wd0f), w(np.asarray(p["wd1"])),
        w(selij),
        w(w1p), w(w2p),
        w(wm0p), w(wm1f), w(wm2p),
        jnp.asarray(bias, dtype=jnp.float32),
    ]


def embed_inputs(x_num, x_cat, p):
    """Embedding lookups (glue, plain JAX — table gathers stay outside the kernel)."""
    num_emb = jnp.einsum("bf,fd->bfd", x_num, p["num_w"][:, 0, :]) + p["num_b"][None]
    cat_emb = p["cat_table"][x_cat + p["offsets"][None]]
    x_emb = jnp.concatenate([num_emb, cat_emb], axis=1)      # (B, F, D)
    return x_emb


# --------------------------- pure-JAX reference -------------------------------
def reference_forward(x_emb, p):
    relu = lambda v: jnp.maximum(v, 0.0)
    B = x_emb.shape[0]
    # SENet over fields
    z = x_emb.mean(-1)
    a = relu(relu(z @ p["wse1"]) @ p["wse2"])
    dyn = x_emb * a[:, :, None]
    flat = x_emb.reshape(B, FD)
    h = relu((flat @ p["wd0"] + p["bd0"]) * p["sd0"] + p["td0"])
    stat = (h @ p["wd1"] + p["bd1"]).reshape(B, NUM_FIELDS, D_EMBED)
    dual = dyn + stat

    def bilinear(e):
        outs = [(e[:, i, :] @ p["wpair"][q]) * e[:, j, :]
                for q, (i, j) in enumerate(PAIRS)]
        return jnp.stack(outs, axis=1)                       # (B, P, D)

    bil, bil_dual = bilinear(x_emb), bilinear(dual)

    def fiin(t):
        zp = t.mean(-1)
        ap = relu(relu(zp @ p["wfi1"]) @ p["wfi2"])
        return t * ap[:, :, None] + t

    cat = jnp.concatenate([fiin(bil), fiin(bil_dual)], axis=1).reshape(B, 2 * PD)
    h0 = relu((cat @ p["wm0"] + p["bm0"]) * p["sm0"] + p["tm0"])
    h1 = relu((h0 @ p["wm1"] + p["bm1"]) * p["sm1"] + p["tm1"])
    out = h1 @ p["wm2"] + p["bm2"]
    return out[:, 0] if N_CLASSES == 1 else out


# ----------------------------------- main -------------------------------------
if __name__ == "__main__":
    key = jax.random.PRNGKey(0)
    k_num, *k_cat = jax.random.split(key, 1 + len(CATEGORIES))
    x_num = jax.random.normal(k_num, (BATCH, D_NUMERICAL), dtype=jnp.float32)
    x_cat = jnp.stack(
        [jax.random.randint(k_cat[i], (BATCH,), 0, CATEGORIES[i]) for i in range(len(CATEGORIES))],
        axis=1,
    ).astype(jnp.int32)

    params = make_params()

    x_emb = embed_inputs(x_num, x_cat, params)               # (B, F, D) glue
    x_flat = x_emb.reshape(BATCH, FD)                        # (B, F*D)  glue

    out = fdiiin_pallas(x_flat, kernel_params(params))
    out = jax.block_until_ready(out)

    ref = jax.block_until_ready(reference_forward(x_emb, params))
    assert out.shape == (BATCH,)
    # bf16 MXU operands (f32 accumulation) vs f32 reference -> relaxed tolerance
    np.testing.assert_allclose(np.asarray(out), np.asarray(ref), rtol=2e-2, atol=2e-2)
    print("KERNEL_OK")
</pallas_src>

<mosaic_0001>
module attributes {stable_mosaic.version = 11 : i64} {
  func.func @fdiiin_kernel(%arg0: i32, %arg1: memref<16x56xf32, #tpu.memory_space<vmem>>, %arg2: memref<56x2xbf16, #tpu.memory_space<vmem>>, %arg3: memref<2x56xbf16, #tpu.memory_space<vmem>>, %arg4: memref<56x32xbf16, #tpu.memory_space<vmem>>, %arg5: memref<32x56xbf16, #tpu.memory_space<vmem>>, %arg6: memref<56x512xbf16, #tpu.memory_space<vmem>>, %arg7: memref<256x7xbf16, #tpu.memory_space<vmem>>, %arg8: memref<7x256xbf16, #tpu.memory_space<vmem>>, %arg9: memref<512x64xbf16, #tpu.memory_space<vmem>>, %arg10: memref<64x32xbf16, #tpu.memory_space<vmem>>, %arg11: memref<32x128xbf16, #tpu.memory_space<vmem>>, %arg12: memref<8x128xf32, #tpu.memory_space<vmem>>, %arg13: memref<16x128xf32, #tpu.memory_space<vmem>>) attributes {dimension_semantics = [#tpu.dimension_semantics<arbitrary>], iteration_bounds = array<i64: 1>, scalar_prefetch = 0 : i64, scratch_operands = 0 : i64, tpu.core_type = #tpu.core_type<tc>, window_params = [{transform_indices = @transform_0, window_bounds = array<i64: 16, 56>}, {pipeline_mode = #tpu.pipeline_mode<synchronous>, transform_indices = @transform_1, window_bounds = array<i64: 56, 2>}, {pipeline_mode = #tpu.pipeline_mode<synchronous>, transform_indices = @transform_2, window_bounds = array<i64: 2, 56>}, {pipeline_mode = #tpu.pipeline_mode<synchronous>, transform_indices = @transform_3, window_bounds = array<i64: 56, 32>}, {pipeline_mode = #tpu.pipeline_mode<synchronous>, transform_indices = @transform_4, window_bounds = array<i64: 32, 56>}, {pipeline_mode = #tpu.pipeline_mode<synchronous>, transform_indices = @transform_5, window_bounds = array<i64: 56, 512>}, {pipeline_mode = #tpu.pipeline_mode<synchronous>, transform_indices = @transform_6, window_bounds = array<i64: 256, 7>}, {pipeline_mode = #tpu.pipeline_mode<synchronous>, transform_indices = @transform_7, window_bounds = array<i64: 7, 256>}, {pipeline_mode = #tpu.pipeline_mode<synchronous>, transform_indices = @transform_8, window_bounds = array<i64: 512, 64>}, {pipeline_mode = #tpu.pipeline_mode<synchronous>, transform_indices = @transform_9, window_bounds = array<i64: 64, 32>}, {pipeline_mode = #tpu.pipeline_mode<synchronous>, transform_indices = @transform_10, window_bounds = array<i64: 32, 128>}, {pipeline_mode = #tpu.pipeline_mode<synchronous>, transform_indices = @transform_11, window_bounds = array<i64: 8, 128>}, {transform_indices = @transform_12, window_bounds = array<i64: 16, 128>}]} {
    %c0 = arith.constant 0 : index
    %c0_0 = arith.constant 0 : index
    %0 = vector.load %arg12[%c0, %c0_0] : memref<8x128xf32, #tpu.memory_space<vmem>>, vector<8x128xf32>
    %c0_1 = arith.constant 0 : index
    %c0_2 = arith.constant 0 : index
    %1 = vector.load %arg1[%c0_1, %c0_2] : memref<16x56xf32, #tpu.memory_space<vmem>>, vector<16x56xf32>
    %2 = arith.truncf %1 : vector<16x56xf32> to vector<16x56xbf16>
    %c0_3 = arith.constant 0 : index
    %c0_4 = arith.constant 0 : index
    %3 = vector.load %arg2[%c0_3, %c0_4] : memref<56x2xbf16, #tpu.memory_space<vmem>>, vector<56x2xbf16>
    %cst = arith.constant dense<0.000000e+00> : vector<16x2xf32>
    %4 = tpu.matmul %2, %3, %cst {dimension_numbers = #tpu.dot_dimension_numbers<[1], [0], [0], [1], [0, 0, 1, 1], [], []>} : vector<16x56xbf16>, vector<56x2xbf16>, vector<16x2xf32> -> vector<16x2xf32>
    %cst_5 = arith.constant 0.000000e+00 : f32
    %5 = vector.broadcast %cst_5 : f32 to vector<16x2xf32>
    %6 = arith.maximumf %4, %5 : vector<16x2xf32>
    %c0_6 = arith.constant 0 : index
    %c0_7 = arith.constant 0 : index
    %7 = vector.load %arg3[%c0_6, %c0_7] : memref<2x56xbf16, #tpu.memory_space<vmem>>, vector<2x56xbf16>
    %8 = arith.truncf %6 : vector<16x2xf32> to vector<16x2xbf16>
    %cst_8 = arith.constant dense<0.000000e+00> : vector<16x56xf32>
    %9 = tpu.matmul %8, %7, %cst_8 {dimension_numbers = #tpu.dot_dimension_numbers<[1], [0], [0], [1], [0, 0, 1, 1], [], []>} : vector<16x2xbf16>, vector<2x56xbf16>, vector<16x56xf32> -> vector<16x56xf32>
    %cst_9 = arith.constant 0.000000e+00 : f32
    %10 = vector.broadcast %cst_9 : f32 to vector<16x56xf32>
    %11 = arith.maximumf %9, %10 : vector<16x56xf32>
    %12 = arith.mulf %1, %11 : vector<16x56xf32>
    %c0_10 = arith.constant 0 : index
    %c0_11 = arith.constant 0 : index
    %13 = vector.load %arg4[%c0_10, %c0_11] : memref<56x32xbf16, #tpu.memory_space<vmem>>, vector<56x32xbf16>
    %cst_12 = arith.constant dense<0.000000e+00> : vector<16x32xf32>
    %14 = tpu.matmul %2, %13, %cst_12 {dimension_numbers = #tpu.dot_dimension_numbers<[1], [0], [0], [1], [0, 0, 1, 1], [], []>} : vector<16x56xbf16>, vector<56x32xbf16>, vector<16x32xf32> -> vector<16x32xf32>
    %15 = vector.extract_strided_slice %0 {offsets = [0, 0], sizes = [1, 32], strides = [1, 1]} : vector<8x128xf32> to vector<1x32xf32>
    %16 = vector.broadcast %15 : vector<1x32xf32> to vector<16x32xf32>
    %17 = arith.addf %14, %16 : vector<16x32xf32>
    %cst_13 = arith.constant 0.000000e+00 : f32
    %18 = vector.broadcast %cst_13 : f32 to vector<16x32xf32>
    %19 = arith.maximumf %17, %18 : vector<16x32xf32>
    %c0_14 = arith.constant 0 : index
    %c0_15 = arith.constant 0 : index
    %20 = vector.load %arg5[%c0_14, %c0_15] : memref<32x56xbf16, #tpu.memory_space<vmem>>, vector<32x56xbf16>
    %21 = arith.truncf %19 : vector<16x32xf32> to vector<16x32xbf16>
    %cst_16 = arith.constant dense<0.000000e+00> : vector<16x56xf32>
    %22 = tpu.matmul %21, %20, %cst_16 {dimension_numbers = #tpu.dot_dimension_numbers<[1], [0], [0], [1], [0, 0, 1, 1], [], []>} : vector<16x32xbf16>, vector<32x56xbf16>, vector<16x56xf32> -> vector<16x56xf32>
    %23 = vector.extract_strided_slice %0 {offsets = [1, 0], sizes = [1, 56], strides = [1, 1]} : vector<8x128xf32> to vector<1x56xf32>
    %24 = vector.broadcast %23 : vector<1x56xf32> to vector<16x56xf32>
    %25 = arith.addf %22, %24 : vector<16x56xf32>
    %26 = arith.addf %12, %25 : vector<16x56xf32>
    %27 = arith.truncf %26 : vector<16x56xf32> to vector<16x56xbf16>
    %28 = tpu.concatenate %2, %27 in 0 : vector<16x56xbf16>, vector<16x56xbf16> -> vector<32x56xbf16>
    %c0_17 = arith.constant 0 : index
    %c0_18 = arith.constant 0 : index
    %29 = vector.load %arg6[%c0_17, %c0_18] : memref<56x512xbf16, #tpu.memory_space<vmem>>, vector<56x512xbf16>
    %cst_19 = arith.constant dense<0.000000e+00> : vector<32x512xf32>
    %30 = tpu.matmul %28, %29, %cst_19 {dimension_numbers = #tpu.dot_dimension_numbers<[1], [0], [0], [1], [0, 0, 1, 1], [], []>} : vector<32x56xbf16>, vector<56x512xbf16>, vector<32x512xf32> -> vector<32x512xf32>
    %31 = vector.extract_strided_slice %30 {offsets = [0, 0], sizes = [32, 256], strides = [1, 1]} : vector<32x512xf32> to vector<32x256xf32>
    %32 = vector.extract_strided_slice %30 {offsets = [0, 256], sizes = [32, 256], strides = [1, 1]} : vector<32x512xf32> to vector<32x256xf32>
    %33 = arith.mulf %31, %32 : vector<32x256xf32>
    %c0_20 = arith.constant 0 : index
    %c0_21 = arith.constant 0 : index
    %34 = vector.load %arg7[%c0_20, %c0_21] : memref<256x7xbf16, #tpu.memory_space<vmem>>, vector<256x7xbf16>
    %35 = arith.truncf %33 : vector<32x256xf32> to vector<32x256xbf16>
    %cst_22 = arith.constant dense<0.000000e+00> : vector<32x7xf32>
    %36 = tpu.matmul %35, %34, %cst_22 {dimension_numbers = #tpu.dot_dimension_numbers<[1], [0], [0], [1], [0, 0, 1, 1], [], []>} : vector<32x256xbf16>, vector<256x7xbf16>, vector<32x7xf32> -> vector<32x7xf32>
    %cst_23 = arith.constant 0.000000e+00 : f32
    %37 = vector.broadcast %cst_23 : f32 to vector<32x7xf32>
    %38 = arith.maximumf %36, %37 : vector<32x7xf32>
    %c0_24 = arith.constant 0 : index
    %c0_25 = arith.constant 0 : index
    %39 = vector.load %arg8[%c0_24, %c0_25] : memref<7x256xbf16, #tpu.memory_space<vmem>>, vector<7x256xbf16>
    %40 = arith.truncf %38 : vector<32x7xf32> to vector<32x7xbf16>
    %cst_26 = arith.constant dense<0.000000e+00> : vector<32x256xf32>
    %41 = tpu.matmul %40, %39, %cst_26 {dimension_numbers = #tpu.dot_dimension_numbers<[1], [0], [0], [1], [0, 0, 1, 1], [], []>} : vector<32x7xbf16>, vector<7x256xbf16>, vector<32x256xf32> -> vector<32x256xf32>
    %cst_27 = arith.constant 0.000000e+00 : f32
    %42 = vector.broadcast %cst_27 : f32 to vector<32x256xf32>
    %43 = arith.maximumf %41, %42 : vector<32x256xf32>
    %44 = arith.mulf %33, %43 : vector<32x256xf32>
    %45 = arith.addf %44, %33 : vector<32x256xf32>
    %46 = arith.truncf %45 : vector<32x256xf32> to vector<32x256xbf16>
    %c0_28 = arith.constant 0 : index
    %c0_29 = arith.constant 0 : index
    %47 = vector.load %arg9[%c0_28, %c0_29] : memref<512x64xbf16, #tpu.memory_space<vmem>>, vector<512x64xbf16>
    %48 = vector.extract_strided_slice %46 {offsets = [0, 0], sizes = [16, 256], strides = [1, 1]} : vector<32x256xbf16> to vector<16x256xbf16>
    %49 = vector.extract_strided_slice %47 {offsets = [0, 0], sizes = [256, 64], strides = [1, 1]} : vector<512x64xbf16> to vector<256x64xbf16>
    %cst_30 = arith.constant dense<0.000000e+00> : vector<16x64xf32>
    %50 = tpu.matmul %48, %49, %cst_30 {dimension_numbers = #tpu.dot_dimension_numbers<[1], [0], [0], [1], [0, 0, 1, 1], [], []>} : vector<16x256xbf16>, vector<256x64xbf16>, vector<16x64xf32> -> vector<16x64xf32>
    %51 = vector.extract_strided_slice %46 {offsets = [16, 0], sizes = [16, 256], strides = [1, 1]} : vector<32x256xbf16> to vector<16x256xbf16>
    %52 = vector.extract_strided_slice %47 {offsets = [256, 0], sizes = [256, 64], strides = [1, 1]} : vector<512x64xbf16> to vector<256x64xbf16>
    %cst_31 = arith.constant dense<0.000000e+00> : vector<16x64xf32>
    %53 = tpu.matmul %51, %52, %cst_31 {dimension_numbers = #tpu.dot_dimension_numbers<[1], [0], [0], [1], [0, 0, 1, 1], [], []>} : vector<16x256xbf16>, vector<256x64xbf16>, vector<16x64xf32> -> vector<16x64xf32>
    %54 = arith.addf %50, %53 : vector<16x64xf32>
    %55 = vector.extract_strided_slice %0 {offsets = [2, 0], sizes = [1, 64], strides = [1, 1]} : vector<8x128xf32> to vector<1x64xf32>
    %56 = vector.broadcast %55 : vector<1x64xf32> to vector<16x64xf32>
    %57 = arith.addf %54, %56 : vector<16x64xf32>
    %cst_32 = arith.constant 0.000000e+00 : f32
    %58 = vector.broadcast %cst_32 : f32 to vector<16x64xf32>
    %59 = arith.maximumf %57, %58 : vector<16x64xf32>
    %c0_33 = arith.constant 0 : index
    %c0_34 = arith.constant 0 : index
    %60 = vector.load %arg10[%c0_33, %c0_34] : memref<64x32xbf16, #tpu.memory_space<vmem>>, vector<64x32xbf16>
    %61 = arith.truncf %59 : vector<16x64xf32> to vector<16x64xbf16>
    %cst_35 = arith.constant dense<0.000000e+00> : vector<16x32xf32>
    %62 = tpu.matmul %61, %60, %cst_35 {dimension_numbers = #tpu.dot_dimension_numbers<[1], [0], [0], [1], [0, 0, 1, 1], [], []>} : vector<16x64xbf16>, vector<64x32xbf16>, vector<16x32xf32> -> vector<16x32xf32>
    %63 = vector.extract_strided_slice %0 {offsets = [3, 0], sizes = [1, 32], strides = [1, 1]} : vector<8x128xf32> to vector<1x32xf32>
    %64 = vector.broadcast %63 : vector<1x32xf32> to vector<16x32xf32>
    %65 = arith.addf %62, %64 : vector<16x32xf32>
    %cst_36 = arith.constant 0.000000e+00 : f32
    %66 = vector.broadcast %cst_36 : f32 to vector<16x32xf32>
    %67 = arith.maximumf %65, %66 : vector<16x32xf32>
    %c0_37 = arith.constant 0 : index
    %c0_38 = arith.constant 0 : index
    %68 = vector.load %arg11[%c0_37, %c0_38] : memref<32x128xbf16, #tpu.memory_space<vmem>>, vector<32x128xbf16>
    %69 = arith.truncf %67 : vector<16x32xf32> to vector<16x32xbf16>
    %cst_39 = arith.constant dense<0.000000e+00> : vector<16x128xf32>
    %70 = tpu.matmul %69, %68, %cst_39 {dimension_numbers = #tpu.dot_dimension_numbers<[1], [0], [0], [1], [0, 0, 1, 1], [], []>} : vector<16x32xbf16>, vector<32x128xbf16>, vector<16x128xf32> -> vector<16x128xf32>
    %71 = vector.extract_strided_slice %0 {offsets = [4, 0], sizes = [1, 128], strides = [1, 1]} : vector<8x128xf32> to vector<1x128xf32>
    %72 = vector.broadcast %71 : vector<1x128xf32> to vector<16x128xf32>
    %73 = arith.addf %70, %72 : vector<16x128xf32>
    %c0_40 = arith.constant 0 : index
    %c0_41 = arith.constant 0 : index
    %74 = vector.load %arg13[%c0_40, %c0_41] : memref<16x128xf32, #tpu.memory_space<vmem>>, vector<16x128xf32>
    tpu.vector_store %arg13[%c0_40, %c0_41], %73 {strides = array<i32>} : memref<16x128xf32, #tpu.memory_space<vmem>>, vector<16x128xf32>,
    return
  }
  func.func @transform_0(%arg0: i32) -> (i32, i32) {
    %c0_i32 = arith.constant 0 : i32
    %c0_i32_0 = arith.constant 0 : i32
    return %arg0, %c0_i32 : i32, i32
  }
  func.func @transform_1(%arg0: i32) -> (i32, i32) {
    %c0_i32 = arith.constant 0 : i32
    %c0_i32_0 = arith.constant 0 : i32
    %c0_i32_1 = arith.constant 0 : i32
    return %c0_i32, %c0_i32_0 : i32, i32
  }
  func.func @transform_2(%arg0: i32) -> (i32, i32) {
    %c0_i32 = arith.constant 0 : i32
    %c0_i32_0 = arith.constant 0 : i32
    %c0_i32_1 = arith.constant 0 : i32
    return %c0_i32, %c0_i32_0 : i32, i32
  }
  func.func @transform_3(%arg0: i32) -> (i32, i32) {
    %c0_i32 = arith.constant 0 : i32
    %c0_i32_0 = arith.constant 0 : i32
    %c0_i32_1 = arith.constant 0 : i32
    return %c0_i32, %c0_i32_0 : i32, i32
  }
  func.func @transform_4(%arg0: i32) -> (i32, i32) {
    %c0_i32 = arith.constant 0 : i32
    %c0_i32_0 = arith.constant 0 : i32
    %c0_i32_1 = arith.constant 0 : i32
    return %c0_i32, %c0_i32_0 : i32, i32
  }
  func.func @transform_5(%arg0: i32) -> (i32, i32) {
    %c0_i32 = arith.constant 0 : i32
    %c0_i32_0 = arith.constant 0 : i32
    %c0_i32_1 = arith.constant 0 : i32
    return %c0_i32, %c0_i32_0 : i32, i32
  }
  func.func @transform_6(%arg0: i32) -> (i32, i32) {
    %c0_i32 = arith.constant 0 : i32
    %c0_i32_0 = arith.constant 0 : i32
    %c0_i32_1 = arith.constant 0 : i32
    return %c0_i32, %c0_i32_0 : i32, i32
  }
  func.func @transform_7(%arg0: i32) -> (i32, i32) {
    %c0_i32 = arith.constant 0 : i32
    %c0_i32_0 = arith.constant 0 : i32
    %c0_i32_1 = arith.constant 0 : i32
    return %c0_i32, %c0_i32_0 : i32, i32
  }
  func.func @transform_8(%arg0: i32) -> (i32, i32) {
    %c0_i32 = arith.constant 0 : i32
    %c0_i32_0 = arith.constant 0 : i32
    %c0_i32_1 = arith.constant 0 : i32
    return %c0_i32, %c0_i32_0 : i32, i32
  }
  func.func @transform_9(%arg0: i32) -> (i32, i32) {
    %c0_i32 = arith.constant 0 : i32
    %c0_i32_0 = arith.constant 0 : i32
    %c0_i32_1 = arith.constant 0 : i32
    return %c0_i32, %c0_i32_0 : i32, i32
  }
  func.func @transform_10(%arg0: i32) -> (i32, i32) {
    %c0_i32 = arith.constant 0 : i32
    %c0_i32_0 = arith.constant 0 : i32
    %c0_i32_1 = arith.constant 0 : i32
    return %c0_i32, %c0_i32_0 : i32, i32
  }
  func.func @transform_11(%arg0: i32) -> (i32, i32) {
    %c0_i32 = arith.constant 0 : i32
    %c0_i32_0 = arith.constant 0 : i32
    %c0_i32_1 = arith.constant 0 : i32
    return %c0_i32, %c0_i32_0 : i32, i32
  }
  func.func @transform_12(%arg0: i32) -> (i32, i32) {
    %c0_i32 = arith.constant 0 : i32
    %c0_i32_0 = arith.constant 0 : i32
    return %arg0, %c0_i32 : i32, i32
  }
}

</mosaic_0001>

<bundles_post_ra>
// kernel: tpu_custom_call.1
= control target key start
LH: loop header
LB: loop body
LE: loop exit
PB: predicated region body
PF: predicated region fallthrough
CT: control target
= control target key end

     0   :  { %vm79_vm0 = vcmask 1043456   ;;  %v1710_v1 = vmov 0.0   ;;  %vm1711_vm1 = vmmov 0   ;;  %vm75_vm2 = vcmask 457728   ;;  %s2160_s0 = inlined_call_operand.vmem [shape: f32[16,56], index: 0, kind: input, shape index: {}]   ;;  %s2161_s1 = inlined_call_operand.vmem [shape: bf16[56,2], index: 1, kind: input, shape index: {}]   ;;  %s2162_s2 = inlined_call_operand.vmem [shape: bf16[2,56], index: 2, kind: input, shape index: {}]   ;;  %s2163_s3 = inlined_call_operand.vmem [shape: bf16[56,32], index: 3, kind: input, shape index: {}]   ;;  %s2164_s4 = inlined_call_operand.vmem [shape: bf16[32,56], index: 4, kind: input, shape index: {}]   ;;  %s2165_s5 = inlined_call_operand.vmem [shape: bf16[56,512], index: 5, kind: input, shape index: {}]   ;;  %s2166_s6 = inlined_call_operand.vmem [shape: bf16[256,7], index: 6, kind: input, shape index: {}]   ;;  %s2167_s7 = inlined_call_operand.vmem [shape: bf16[7,256], index: 7, kind: input, shape index: {}]   ;;  %s2168_s8 = inlined_call_operand.vmem [shape: bf16[512,64], index: 8, kind: input, shape index: {}]   ;;  %s2169_s9 = inlined_call_operand.vmem [shape: bf16[64,32], index: 9, kind: input, shape index: {}]   ;;  %s2170_s10 = inlined_call_operand.vmem [shape: bf16[32,128], index: 10, kind: input, shape index: {}]   ;;  %s2171_s11 = inlined_call_operand.vmem [shape: f32[8,128], index: 11, kind: input, shape index: {}]   ;;  %s2172_s12 = inlined_call_operand.hbm [shape: f32[16,128], index: 12, kind: output, shape index: {}]  }
   0x1   :  { %v1600_v0 = vld [vmem:[%s2161_s1 + $0x18] ss:$0 sps:$4 sm:$0xff]   ;;  %1535 = vmatprep.subr.bf16.mxu0 %v1710_v1  ;;  %1547 = vmatprep.subr.bf16.mxu1 %v1710_v1  ;;  %v1601_v3 = vld [vmem:[%s2161_s1 + $0x10] sm:$0xff]   ;;  %v1602_v4 = vld [vmem:[%s2161_s1 + $0x8] sm:$0xff]  }
   0x2   :  { %v81_v2 = vsel %vm79_vm0, %v1600_v0, 0  ;;  %1543 = vmatprep.mubr.msk.bf16.mxu0 %vm1711_vm1, %v1710_v1  ;;  %1549 = vmatprep.mubr.msk.bf16.mxu1 %vm1711_vm1, %v1710_v1  ;;  %v1603_v5 = vld [vmem:[%s2161_s1] sm:$0xff]   ;;  %v1811_v7 = vld [vmem:[%s2160_s0 + $0x8] sm:$0xff] }
   0x3   :  { %1536 = vmatpush3.bf16.msra.mxu0 %v81_v2  ;;  %v1806_v6 = vld [vmem:[%s2160_s0] sm:$0xff] }
   0x4   :  { %1537 = vmatprep.subr.bf16.mxu0 %v1710_v1  ;;  %v1816_v8 = vpack.c.bf16 %v1811_v7, %v1806_v6 }
   0x7   :  { %1538 = vmatpush3.bf16.msra.mxu0 %v1601_v3 }
   0x8   :  { %1539 = vmatprep.subr.bf16.mxu0 %v1710_v1 }
   0xb   :  { %1540 = vmatpush3.bf16.msra.mxu0 %v1602_v4 }
   0xc   :  { %1541 = vmatprep.subr.bf16.mxu0 %v1710_v1 }
   0xf   :  { %1542 = vmatpush3.bf16.msra.mxu0 %v1603_v5 }
  0x10   :  { %1565 = vmatprep.subr.bf16.mxu0 %v1710_v1 }
  0x12   :  { %1544 = vmatmul.mubr.msk.bf16.vlgmr.msra.gmra.mxu0 %vm75_vm2, %v1816_v8 }
  0x13   :  { %1569 = vmatprep.mubr.msk.bf16.mxu0 %vm1711_vm1, %v1710_v1 }
  0x14   :  { %17 = vsyncpa [#allocation3], 0  ;;  %v126_v9 = vld [vmem:[%s2162_s2] sm:$0x1]  ;;  %vm132_vm3 = vcmask 1040384   ;;  %vm128_vm4 = vcmask 15360   ;;  %v188_v43 = vlaneseq }
  0x15   :  { %v134_v10 = vsel %vm132_vm3, %v126_v9, 0  ;;  %v1604_v13 = vld [vmem:[%s2163_s3 + $0x18] ss:$0 sps:$4 sm:$0xff]   ;;  %v1605_v20 = vld [vmem:[%s2163_s3 + $0x10] sm:$0xff]   ;;  %v1606_v21 = vld [vmem:[%s2163_s3 + $0x8] sm:$0xff]   ;;  %v1712_v37 = vmov 0  }
  0x16   :  { %1548 = vmatpush3.bf16.msra.mxu1 %v134_v10  ;;  %v214_v19 = vsel %vm79_vm0, %v1604_v13, 0  ;;  %v1607_v22 = vld [vmem:[%s2163_s3] sm:$0xff]   ;;  %v1608_v23 = vld [vmem:[%s2164_s4 + $0x8] sm:$0xff]   ;;  %v1632_v38 = vld [vmem:[%s2166_s6 + $0x78] sm:$0xff]   ;;  %v1898_v46 = vshrl.u32 %v188_v43, 7  ;;  %vm280_vm5 = vcmask 261120  }
  0x17   :  { %1553 = vmatprep.subr.bf16.mxu1 %v1710_v1  ;;  %1566 = vmatpush3.bf16.msra.mxu0 %v1608_v23  ;;  %v1609_v24 = vld [vmem:[%s2164_s4] sm:$0xff]   ;;  %v341_v26 = vld [vmem:[%s2165_s5 + $0x68] sm:$0xff]  ;;  %v1633_v39 = vld [vmem:[%s2166_s6 + $0x38] sm:$0xff]   ;;  %vm741_vm6 = vcmask 1042432   ;;  %vm734_vm7 = vcmask 56320   ;;  %vm1214_vm8 = vcmask 523264  }
  0x18   :  { %1567 = vmatprep.subr.bf16.mxu0 %v1710_v1  ;;  %v340_v25 = vld [vmem:[%s2165_s5 + $0x60] sm:$0xff]  ;;  %v1373_v28 = vcombine.high %v341_v26, %v341_v26  ;;  %v1634_v40 = vld [vmem:[%s2166_s6 + $0x70] sm:$0xff]   ;;  %v190_v47 = vsub.s32 0, %v1898_v46  ;;  %v1372_v55 = vcombine.low %v341_v26, %v341_v26  ;;  %v1619_v61 = vld [vmem:[%s2165_s5 + $0x4c] ss:$16 sps:$4 sm:$0xff]  }
  0x19   :  { %v1371_v27 = vcombine.high %v340_v25, %v340_v25  ;;  %v1370_v29 = vcombine.low %v340_v25, %v340_v25  ;;  %v1614_v31 = vld [vmem:[%s2165_s5 + $0x40] ss:$16 sps:$4 sm:$0xff]   ;;  %v1616_v32 = vld [vmem:[%s2165_s5 + $0x44] ss:$16 sps:$4 sm:$0xff]   ;;  %v1617_v62 = vld [vmem:[%s2165_s5 + $0x48] ss:$16 sps:$4 sm:$0xff]  }
  0x1a   :  { %v1620_v33 = vld [vmem:[%s2165_s5 + $0x20] ss:$16 sps:$4 sm:$0xff]   ;;  %v1622_v34 = vld [vmem:[%s2165_s5 + $0x24] ss:$16 sps:$4 sm:$0xff]   ;;  %v422_v60 = vsel %vm79_vm0, %v1372_v55, 0  ;;  %v1636_v5 = vld [vmem:[%s2166_s6 + $0x68] sm:$0xff]  }
  0x1b   :  { %1568 = vmatpush3.bf16.msra.mxu0 %v1609_v24  ;;  %v416_v30 = vsel %vm79_vm0, %v1370_v29, 0  ;;  %v1626_v35 = vld [vmem:[%s2165_s5] ss:$16 sps:$4 sm:$0xff]   ;;  %v1628_v36 = vld [vmem:[%s2165_s5 + $0x4] ss:$16 sps:$4 sm:$0xff]   ;;  %v1637_v9 = vld [vmem:[%s2166_s6 + $0x28] sm:$0xff]  }
  0x1c   :  { %1377 = vmatprep.subr.msk.bf16.mxu0 %vm79_vm0, %v1373_v28  ;;  %v1904_v48 = vld [vmem:[%s2171_s11] sm:$0xff]  ;;  %v1625_v63 = vld [vmem:[%s2165_s5 + $0x2c] ss:$16 sps:$4 sm:$0xff]   ;;  %v1623_v0 = vld [vmem:[%s2165_s5 + $0x28] ss:$16 sps:$4 sm:$0xff]  }
  0x1d   :  { %v191_v49 = vrot.slane %v1904_v48, %v190_v47  ;;  %v1631_v2 = vld [vmem:[%s2165_s5 + $0xc] ss:$16 sps:$4 sm:$0xff]   ;;  %v1629_v3 = vld [vmem:[%s2165_s5 + $0x8] ss:$16 sps:$4 sm:$0xff]   ;;  %v1635_v4 = vld [vmem:[%s2166_s6 + $0x30] sm:$0xff]  }
  0x1e   :  { %v1639_v10 = vld [vmem:[%s2166_s6 + $0x20] sm:$0xff]   ;;  %v1642_v13 = vld [vmem:[%s2166_s6 + $0x50] sm:$0xff]  }
  0xd2   :  { %v117_v11 = vpop.f32.mrf.mxu0 }
  0xd3   :  { %v124_v15 = vmax.f32 %v117_v11, 0.0  ;;  %v1640_v11 = vld [vmem:[%s2166_s6 + $0x58] sm:$0xff]  }
  0xd4   :  { %v1545_v12 = vpop.f32.mrf.mxu0 }
  0xd5   :  { %v1641_v12 = vld [vmem:[%s2166_s6 + $0x18] sm:$0xff]  }
  0xd6   :  { %v120_v14 = vpop.f32.mrf.mxu0 }
  0xd7   :  { %v125_v16 = vmax.f32 %v120_v14, 0.0  ;;  %v1643_v14 = vld [vmem:[%s2166_s6 + $0x10] sm:$0xff]  }
  0xd8   :  { %v1546_v17 = vpop.f32.mrf.mxu0 }
  0xd9   :  { %v127_v18 = vpack.c.bf16 %v125_v16, %v124_v15  ;;  %v1644_v15 = vld [vmem:[%s2166_s6 + $0x48] sm:$0xff]   ;;  %v1646_v17 = vld [vmem:[%s2166_s6 + $0x40] sm:$0xff]  }
  0xda   :  { %v1645_v16 = vld [vmem:[%s2166_s6 + $0x8] sm:$0xff]  }
  0xdb   :  { %1550 = vmatmul.mubr.msk.bf16.vlgmr.msra.gmra.mxu1 %vm128_vm4, %v127_v18  ;;  %v1647_v18 = vld [vmem:[%s2166_s6] sm:$0xff]  }
  0xdc   :  { %1554 = vmatpush3.bf16.msra.mxu1 %v214_v19  ;;  %1561 = vmatprep.mubr.msk.bf16.mxu1 %vm1711_vm1, %v1710_v1  ;;  %v266_v19 = vsub.s32 1, %v1898_v46 }
  0xdd   :  { %1555 = vmatprep.subr.bf16.mxu1 %v1710_v1 }
  0xe0   :  { %1556 = vmatpush3.bf16.msra.mxu1 %v1605_v20  ;;  %v267_v20 = vrot.slane %v1904_v48, %v266_v19  ;;  %v1650_v19 = vld [vmem:[%s2168_s8 + $0x78] sm:$0xff]  }
  0xe1   :  { %1557 = vmatprep.subr.bf16.mxu1 %v1710_v1 }
  0xe4   :  { %1558 = vmatpush3.bf16.msra.mxu1 %v1606_v21 }
  0xe5   :  { %1559 = vmatprep.subr.bf16.mxu1 %v1710_v1 }
  0xe8   :  { %1560 = vmatpush3.bf16.msra.mxu1 %v1607_v22 }
  0xe9   :  { %1374 = vmatprep.subr.msk.bf16.mxu1 %vm79_vm0, %v1371_v27 }
  0xeb   :  { %1562 = vmatmul.mubr.msk.bf16.vlgmr.msra.gmra.mxu1 %vm75_vm2, %v1816_v8 }
  0xec   :  { %436 = vmatpush1.bf16.msra.mxu1 %v416_v30  ;;  %459 = vmatprep.mubr.bf16.mxu1 %v1712_v37 }
  0xed   :  { %437 = vmatprep.subr.bf16.mxu1 %v1616_v32 }
  0xf0   :  { %438 = vmatpush1.bf16.msra.mxu1 %v1614_v31 }
  0xf1   :  { %439 = vmatprep.subr.bf16.mxu1 %v1622_v34 }
  0xf4   :  { %440 = vmatpush1.bf16.msra.mxu1 %v1620_v33 }
  0xf5   :  { %441 = vmatprep.subr.bf16.mxu1 %v1628_v36 }
  0xf8   :  { %442 = vmatpush1.bf16.msra.mxu1 %v1626_v35 }
  0xf9   :  { %1455 = vmatprep.subr.bf16.mxu1 %v1632_v38 }
  0xfb   :  { %1375 = vmatmul.mubr.msk.bf16.vlgmr.msra.gmra.mxu1 %vm75_vm2, %v1816_v8 }
  0xfc   :  { %469 = vmatprep.mubr.bf16.mxu1 %v1712_v37  ;;  %1456 = vmatpush3.bf16.msra.mxu1 %v1633_v39 }
  0xfd   :  { %1457 = vmatprep.subr.bf16.mxu1 %v1634_v40 }
 0x100   :  { %1458 = vmatpush3.bf16.msra.mxu1 %v1635_v4 }
 0x101   :  { %1459 = vmatprep.subr.bf16.mxu1 %v1636_v5 }
 0x104   :  { %1460 = vmatpush3.bf16.msra.mxu1 %v1637_v9 }
 0x19b   :  { %v1894_v41 = vpop.f32.mrf.mxu1 }
 0x19c   :  { %v177_v22 = vmax.f32 %v1894_v41, 0.0 }
 0x19d   :  { %v1551_v42 = vpop.f32.mrf.mxu1 }
 0x19e   :  { %v179_v27 = vmul.f32 %v177_v22, %v1806_v6  ;;  %v1653_v22 = vld [vmem:[%s2168_s8 + $0x30] sm:$0xff]  }
 0x19f   :  { %v1896_v44 = vpop.f32.mrf.mxu1 }
 0x1a0   :  { %v178_v23 = vmax.f32 %v1896_v44, 0.0 }
 0x1a1   :  { %v1552_v45 = vpop.f32.mrf.mxu1 }
 0x1a2   :  { %v180_v28 = vmul.f32 %v178_v23, %v1811_v7  ;;  %v1655_v23 = vld [vmem:[%s2168_s8 + $0x28] sm:$0xff]  }
 0x1ab   :  { %v250_v50 = vpop.f32.mrf.mxu1 }
 0x1ac   :  { %v251_v52 = vadd.f32 %v250_v50, %v191_v49 }
 0x1ad   :  { %v1563_v51 = vpop.f32.mrf.mxu1 }
 0x1ae   :  { %v257_v57 = vmax.f32 %v251_v52, 0.0  ;;  %v1713_v51 = vmov 65535  }
 0x1af   :  { %v253_v53 = vpop.f32.mrf.mxu1  ;;  %v742_v52 = vsel %vm741_vm6, 4294967295, %v1713_v51 }
 0x1b0   :  { %v254_v54 = vadd.f32 %v253_v53, %v191_v49  ;;  %v726_v49 = vld [vmem:[%s2167_s7] sm:$0xff] }
 0x1b1   :  { %v1564_v56 = vpop.f32.mrf.mxu1  ;;  %v1397_v50 = vcombine.high %v726_v49, %v726_v49  ;;  %v1396_v53 = vcombine.low %v726_v49, %v726_v49 }
 0x1b2   :  { %v258_v58 = vmax.f32 %v254_v54, 0.0  ;;  %v743_v54 = vsel %vm79_vm0, %v742_v52, 0 }
 0x1b3   :  { %v748_v55 = vand.u32 %v1397_v50, %v743_v54  ;;  %v745_v56 = vand.u32 %v1396_v53, %v743_v54 }
 0x1b4   :  { %v263_v59 = vpack.c.bf16 %v258_v58, %v257_v57 }
 0x1b6   :  { %1570 = vmatmul.mubr.msk.bf16.vlgmr.msra.gmra.mxu0 %vm280_vm5, %v263_v59 }
 0x1b7   :  { %489 = vmatpush1.bf16.msra.mxu0 %v422_v60  ;;  %512 = vmatprep.mubr.bf16.mxu0 %v1712_v37 }
 0x1b8   :  { %490 = vmatprep.subr.bf16.mxu0 %v1619_v61 }
 0x1bb   :  { %491 = vmatpush1.bf16.msra.mxu0 %v1617_v62  ;;  %v461_v33 = vpop.f32.mrf.mxu1 }
 0x1bc   :  { %492 = vmatprep.subr.bf16.mxu0 %v1625_v63 }
 0x1bd   :  { %v463_v35 = vpop.f32.mrf.mxu1 }
 0x1bf   :  { %493 = vmatpush1.bf16.msra.mxu0 %v1623_v0  ;;  %v465_v38 = vpop.f32.mrf.mxu1 }
 0x1c0   :  { %494 = vmatprep.subr.bf16.mxu0 %v1631_v2 }
 0x1c1   :  { %v467_v7 = vpop.f32.mrf.mxu1 }
 0x1c3   :  { %495 = vmatpush1.bf16.msra.mxu0 %v1629_v3 }
 0x1c4   :  { %764 = vmatprep.subr.bf16.mxu0 %v748_v55 }
 0x1c6   :  { %1378 = vmatmul.mubr.msk.bf16.vlgmr.msra.gmra.mxu0 %vm75_vm2, %v1816_v8  ;;  %v1638_v8 = vld [vmem:[%s2166_s6 + $0x60] sm:$0xff]  }
 0x1c7   :  { %522 = vmatprep.mubr.bf16.mxu0 %v1712_v37  ;;  %1461 = vmatprep.subr.bf16.mxu1 %v1638_v8 }
 0x1c8   :  { %1462 = vmatpush3.bf16.msra.mxu1 %v1639_v10  ;;  %765 = vmatpush1.bf16.msra.mxu0 %v745_v56 }
 0x1c9   :  { %1463 = vmatprep.subr.bf16.mxu1 %v1640_v11 }
 0x1cc   :  { %1464 = vmatpush3.bf16.msra.mxu1 %v1641_v12 }
 0x1cd   :  { %1465 = vmatprep.subr.bf16.mxu1 %v1642_v13 }
 0x1d0   :  { %1466 = vmatpush3.bf16.msra.mxu1 %v1643_v14 }
 0x1d1   :  { %1467 = vmatprep.subr.bf16.mxu1 %v1644_v15 }
 0x1d4   :  { %1468 = vmatpush3.bf16.msra.mxu1 %v1645_v16 }
 0x1d5   :  { %1469 = vmatprep.subr.bf16.mxu1 %v1646_v17 }
 0x1d8   :  { %1470 = vmatpush3.bf16.msra.mxu1 %v1647_v18 }
 0x1d9   :  { %1505 = vmatprep.subr.bf16.mxu1 %v1650_v19  ;;  %v1680_v19 = vld [vmem:[%s2168_s8 + $0xc0] sm:$0xff]  }
 0x276   :  { %v318_v21 = vpop.f32.mrf.mxu0 }
 0x277   :  { %v319_v25 = vadd.f32 %v318_v21, %v267_v20  ;;  %v1652_v21 = vld [vmem:[%s2168_s8 + $0x70] sm:$0xff]  }
 0x278   :  { %v1571_v24 = vpop.f32.mrf.mxu0 }
 0x279   :  { %v325_v31 = vadd.f32 %v319_v25, %v179_v27  ;;  %v1656_v24 = vld [vmem:[%s2168_s8 + $0x60] sm:$0xff]   ;;  %v1659_v27 = vld [vmem:[%s2168_s8 + $0x18] sm:$0xff]  }
 0x27a   :  { %v321_v26 = vpop.f32.mrf.mxu0  ;;  %v1657_v25 = vld [vmem:[%s2168_s8 + $0x20] sm:$0xff]  }
 0x27b   :  { %v322_v29 = vadd.f32 %v321_v26, %v267_v20  ;;  %v1651_v20 = vld [vmem:[%s2168_s8 + $0x38] sm:$0xff]  }
 0x27c   :  { %v1572_v30 = vpop.f32.mrf.mxu0  ;;  %v1658_v26 = vld [vmem:[%s2168_s8 + $0x58] sm:$0xff]  }
 0x27d   :  { %v326_v32 = vadd.f32 %v322_v29, %v180_v28  ;;  %v1660_v28 = vld [vmem:[%s2168_s8 + $0x50] sm:$0xff]   ;;  %v1662_v30 = vld [vmem:[%s2168_s8 + $0x48] sm:$0xff]  }
 0x27e   :  { %v1661_v29 = vld [vmem:[%s2168_s8 + $0x10] sm:$0xff]  }
 0x27f   :  { %v327_v34 = vpack.c.bf16 %v326_v32, %v325_v31  ;;  %v1663_v31 = vld [vmem:[%s2168_s8 + $0x8] sm:$0xff]   ;;  %v1664_v32 = vld [vmem:[%s2168_s8 + $0x40] sm:$0xff]  }
 0x281   :  { %1376 = vmatmul.mubr.msk.bf16.gmra.mxu1 %vm75_vm2, %v327_v34  ;;  %1379 = vmatmul.mubr.msk.bf16.gmra.mxu0 %vm75_vm2, %v327_v34  ;;  %v1666_v34 = vld [vmem:[%s2168_s8 + $0xf8] sm:$0xff]  }
 0x282   :  { %782 = vmatprep.mubr.bf16.mxu0 %v1712_v37  ;;  %1483 = vmatprep.subr.bf16.mxu0 %v1666_v34 }
 0x286   :  { %v514_v36 = vpop.f32.mrf.mxu0 }
 0x287   :  { %v1979_v40 = vmul.f32 %v514_v36, %v461_v33  ;;  %v1665_v33 = vld [vmem:[%s2168_s8] sm:$0xff]   ;;  %v1668_v36 = vld [vmem:[%s2168_s8 + $0xf0] sm:$0xff]  }
 0x288   :  { %v516_v39 = vpop.f32.mrf.mxu0 }
 0x289   :  { %v1981_v41 = vmul.f32 %v516_v39, %v463_v35  ;;  %v1667_v35 = vld [vmem:[%s2168_s8 + $0xb8] sm:$0xff]   ;;  %v1670_v39 = vld [vmem:[%s2168_s8 + $0xe8] sm:$0xff]  }
 0x28a   :  { %v518_v6 = vpop.f32.mrf.mxu0 }
 0x28b   :  { %v1983_v42 = vmul.f32 %v518_v6, %v465_v38  ;;  %v1669_v38 = vld [vmem:[%s2168_s8 + $0xb0] sm:$0xff]   ;;  %v1671_v6 = vld [vmem:[%s2168_s8 + $0xa8] sm:$0xff]  }
 0x28c   :  { %v520_v43 = vpop.f32.mrf.mxu0 }
 0x28d   :  { %v1985_v44 = vmul.f32 %v520_v43, %v467_v7  ;;  %v573_v45 = vpack.c.bf16 %v1983_v42, %v1979_v40  ;;  %v1672_v7 = vld [vmem:[%s2168_s8 + $0xe0] sm:$0xff]  }
 0x28e   :  { %v1673_v43 = vld [vmem:[%s2168_s8 + $0xa0] sm:$0xff]  }
 0x28f   :  { %v574_v47 = vpack.c.bf16 %v1985_v44, %v1981_v41 }
 0x291   :  { %705 = vmatprep.mubr.bf16.mxu1 %v574_v47 }
 0x292   :  { %706 = vmatmul.mubr.bf16.vlgmr.msra.gmra.mxu1 %v573_v45 }
 0x293   :  { %1506 = vmatpush3.bf16.msra.mxu1 %v1651_v20  ;;  %v1681_v20 = vld [vmem:[%s2168_s8 + $0x80] sm:$0xff]  }
 0x294   :  { %1507 = vmatprep.subr.bf16.mxu1 %v1652_v21 }
 0x297   :  { %1508 = vmatpush3.bf16.msra.mxu1 %v1653_v22 }
 0x341   :  { %v471_v57 = vpop.f32.mrf.mxu1  ;;  %v524_v58 = vpop.f32.mrf.mxu0 }
 0x342   :  { %v2001_v5 = vmul.f32 %v524_v58, %v471_v57 }
 0x343   :  { %v473_v59 = vpop.f32.mrf.mxu1  ;;  %v526_v60 = vpop.f32.mrf.mxu0 }
 0x344   :  { %v1997_v3 = vmul.f32 %v526_v60, %v473_v59 }
 0x345   :  { %v475_v61 = vpop.f32.mrf.mxu1  ;;  %v528_v62 = vpop.f32.mrf.mxu0 }
 0x346   :  { %v1995_v63 = vmul.f32 %v528_v62, %v475_v61 }
 0x347   :  { %v477_v0 = vpop.f32.mrf.mxu1  ;;  %v530_v2 = vpop.f32.mrf.mxu0 }
 0x348   :  { %v1999_v4 = vmul.f32 %v530_v2, %v477_v0  ;;  %v575_v8 = vpack.c.bf16 %v1995_v63, %v2001_v5 }
 0x34a   :  { %v576_v9 = vpack.c.bf16 %v1999_v4, %v1997_v3 }
 0x34c   :  { %713 = vmatprep.mubr.bf16.mxu1 %v576_v9 }
 0x34d   :  { %714 = vmatmul.mubr.bf16.gmra.mxu1 %v575_v8 }
 0x352   :  { %v1471_v10 = vpop.f32.mrf.mxu1 }
 0x354   :  { %v1472_v11 = vpop.f32.mrf.mxu1 }
 0x355   :  { %v1473_v12 = vadd.f32 %v1472_v11, %v1471_v10 }
 0x356   :  { %v1474_v13 = vpop.f32.mrf.mxu1 }
 0x357   :  { %v722_v15 = vmax.f32 %v1473_v12, 0.0 }
 0x358   :  { %v1475_v14 = vpop.f32.mrf.mxu1 }
 0x359   :  { %v1476_v16 = vadd.f32 %v1475_v14, %v1474_v13 }
 0x35b   :  { %v723_v17 = vmax.f32 %v1476_v16, 0.0 }
 0x35d   :  { %v727_v18 = vpack.c.bf16 %v723_v17, %v722_v15  ;;  %v1674_v17 = vld [vmem:[%s2168_s8 + $0xd8] sm:$0xff]  }
 0x35f   :  { %1398 = vmatmul.mubr.msk.bf16.vlgmr.msra.gmra.mxu0 %vm734_vm7, %v727_v18  ;;  %v1679_v18 = vld [vmem:[%s2168_s8 + $0x88] sm:$0xff]  }
 0x360   :  { %792 = vmatprep.mubr.bf16.mxu0 %v1712_v37  ;;  %v1654_v37 = vld [vmem:[%s2168_s8 + $0x68] sm:$0xff]   ;;  %1484 = vmatpush3.bf16.msra.mxu0 %v1667_v35 }
 0x361   :  { %1509 = vmatprep.subr.bf16.mxu1 %v1654_v37  ;;  %1485 = vmatprep.subr.bf16.mxu0 %v1668_v36 }
 0x362   :  { %1510 = vmatpush3.bf16.msra.mxu1 %v1655_v23 }
 0x363   :  { %1511 = vmatprep.subr.bf16.mxu1 %v1656_v24 }
 0x364   :  { %1486 = vmatpush3.bf16.msra.mxu0 %v1669_v38 }
 0x365   :  { %1487 = vmatprep.subr.bf16.mxu0 %v1670_v39  ;;  %v1682_v39 = vld [vmem:[%s2169_s9 + $0x18] sm:$0xff]  }
 0x366   :  { %1512 = vmatpush3.bf16.msra.mxu1 %v1657_v25 }
 0x367   :  { %1513 = vmatprep.subr.bf16.mxu1 %v1658_v26 }
 0x368   :  { %1488 = vmatpush3.bf16.msra.mxu0 %v1671_v6 }
 0x369   :  { %1489 = vmatprep.subr.bf16.mxu0 %v1672_v7 }
 0x36a   :  { %1514 = vmatpush3.bf16.msra.mxu1 %v1659_v27 }
 0x36b   :  { %1515 = vmatprep.subr.bf16.mxu1 %v1660_v28 }
 0x36c   :  { %1490 = vmatpush3.bf16.msra.mxu0 %v1673_v43 }
 0x36d   :  { %1491 = vmatprep.subr.bf16.mxu0 %v1674_v17 }
 0x36e   :  { %1516 = vmatpush3.bf16.msra.mxu1 %v1661_v29 }
 0x36f   :  { %1517 = vmatprep.subr.bf16.mxu1 %v1662_v30 }
 0x372   :  { %1518 = vmatpush3.bf16.msra.mxu1 %v1663_v31 }
 0x373   :  { %1519 = vmatprep.subr.bf16.mxu1 %v1664_v32 }
 0x376   :  { %1520 = vmatpush3.bf16.msra.mxu1 %v1665_v33 }
 0x377   :  { %1585 = vmatprep.subr.bf16.mxu1 %v1710_v1 }
 0x40d   :  { %v1477_v45 = vpop.f32.mrf.mxu1 }
 0x40f   :  { %v1478_v47 = vpop.f32.mrf.mxu1 }
 0x410   :  { %v1479_v50 = vadd.f32 %v1478_v47, %v1477_v45  ;;  %v1171_v45 = vsub.s32 2, %v1898_v46 }
 0x411   :  { %v1480_v49 = vpop.f32.mrf.mxu1 }
 0x412   :  { %v724_v53 = vmax.f32 %v1479_v50, 0.0 }
 0x413   :  { %v1481_v51 = vpop.f32.mrf.mxu1 }
 0x414   :  { %v1482_v52 = vadd.f32 %v1481_v51, %v1480_v49 }
 0x416   :  { %v725_v54 = vmax.f32 %v1482_v52, 0.0 }
 0x418   :  { %v728_v55 = vpack.c.bf16 %v725_v54, %v724_v53  ;;  %v1172_v54 = vrot.slane %v1904_v48, %v1171_v45 }
 0x41a   :  { %1399 = vmatmul.mubr.msk.bf16.gmra.mxu0 %vm734_vm7, %v728_v55 }
 0x41f   :  { %v784_v56 = vpop.f32.mrf.mxu0 }
 0x420   :  { %v803_v59 = vmax.f32 %v784_v56, 0.0 }
 0x421   :  { %v786_v57 = vpop.f32.mrf.mxu0 }
 0x422   :  { %v804_v58 = vmax.f32 %v786_v57, 0.0  ;;  %v811_v8 = vmul.f32 %v803_v59, %v1979_v40 }
 0x423   :  { %v788_v60 = vpop.f32.mrf.mxu0 }
 0x424   :  { %v805_v61 = vmax.f32 %v788_v60, 0.0  ;;  %v812_v0 = vmul.f32 %v804_v58, %v1981_v41  ;;  %v819_v14 = vadd.f32 %v811_v8, %v1979_v40  ;;  %v1676_v40 = vld [vmem:[%s2168_s8 + $0xd0] sm:$0xff]   ;;  %v1188_v8 = vsub.s32 3, %v1898_v46 }
 0x425   :  { %v790_v62 = vpop.f32.mrf.mxu0 }
 0x426   :  { %v813_v2 = vmul.f32 %v805_v61, %v1983_v42  ;;  %v806_v9 = vmax.f32 %v790_v62, 0.0  ;;  %v820_v12 = vadd.f32 %v812_v0, %v1981_v41  ;;  %v1677_v41 = vld [vmem:[%s2168_s8 + $0x90] sm:$0xff]  }
 0x428   :  { %v814_v10 = vmul.f32 %v806_v9, %v1985_v44  ;;  %v821_v11 = vadd.f32 %v813_v2, %v1983_v42  ;;  %v1675_v42 = vld [vmem:[%s2168_s8 + $0x98] sm:$0xff]   ;;  %v1686_v2 = vld [vmem:[%s2170_s10 + $0x8] sm:$0xff]   ;;  %v1687_v9 = vld [vmem:[%s2170_s10] sm:$0xff]   ;;  %s1714_s10 = smov [#allocation2]  }
 0x429   :  { %1492 = vmatpush3.bf16.msra.mxu0 %v1675_v42  ;;  %s1333_s14 = sshll.u32 %s1714_s10, 4  ;;  %s1334_s14 = int_to_ptr.vmem [resolvable:$true] %s1333_s14 }
 0x42a   :  { %v822_v13 = vadd.f32 %v814_v10, %v1985_v44  ;;  %v827_v16 = vpack.c.bf16 %v821_v11, %v819_v14  ;;  %1493 = vmatprep.subr.bf16.mxu0 %v1676_v40  ;;  %v1678_v44 = vld [vmem:[%s2168_s8 + $0xc8] sm:$0xff]   ;;  %v1189_v10 = vrot.slane %v1904_v48, %v1188_v8  ;;  %s1688_s0 = scalar_lea.vmem %s1334_s14, 256  ;;  %p1693_p1 = scmp.lt.s32.totalorder %s1334_s14, %s1334_s14 }
 0x42b   :  { %p1689_p0 = scmp.ne.s32.totalorder %s1334_s14, %s1688_s0  ;;  %p1694_p2 = scmp.lt.s32.totalorder %s1688_s0, %s1688_s0 }
 0x42c   :  { %v828_v15 = vpack.c.bf16 %v822_v13, %v820_v12 }
 0x42d   :  { %1494 = vmatpush3.bf16.msra.mxu0 %v1677_v41  ;;  %p1695_p3 = por %p1694_p2, %p1693_p1 }
 0x42e   :  { %1160 = vmatprep.mubr.bf16.mxu1 %v828_v15  ;;  %1495 = vmatprep.subr.bf16.mxu0 %v1678_v44 }
 0x42f   :  { %1161 = vmatmul.mubr.bf16.vlgmr.msra.gmra.mxu1 %v827_v16  ;;  %p1696_p4 = pnand %p1695_p3, %p1689_p0 }
 0x430   :  { %1589 = vmatprep.mubr.msk.bf16.mxu1 %vm1711_vm1, %v1710_v1  ;;  %1586 = vmatpush3.bf16.msra.mxu1 %v1686_v2 }
 0x431   :  { %1496 = vmatpush3.bf16.msra.mxu0 %v1679_v18  ;;  %1587 = vmatprep.subr.bf16.mxu1 %v1710_v1 }
 0x432   :  { %1497 = vmatprep.subr.bf16.mxu0 %v1680_v19 }
 0x434   :  { %1588 = vmatpush3.bf16.msra.mxu1 %v1687_v9 }
 0x435   :  { %1498 = vmatpush3.bf16.msra.mxu0 %v1681_v20 }
 0x436   :  { %1573 = vmatprep.subr.bf16.mxu0 %v1710_v1 }
 0x4da   :  { %v794_v21 = vpop.f32.mrf.mxu0 }
 0x4db   :  { %v807_v23 = vmax.f32 %v794_v21, 0.0 }
 0x4dc   :  { %v796_v22 = vpop.f32.mrf.mxu0 }
 0x4dd   :  { %v808_v37 = vmax.f32 %v796_v22, 0.0  ;;  %v815_v30 = vmul.f32 %v807_v23, %v2001_v5 }
 0x4de   :  { %v798_v24 = vpop.f32.mrf.mxu0 }
 0x4df   :  { %v809_v25 = vmax.f32 %v798_v24, 0.0  ;;  %v816_v27 = vmul.f32 %v808_v37, %v1997_v3  ;;  %v823_v35 = vadd.f32 %v815_v30, %v2001_v5 }
 0x4e0   :  { %v800_v26 = vpop.f32.mrf.mxu0 }
 0x4e1   :  { %v817_v28 = vmul.f32 %v809_v25, %v1995_v63  ;;  %v810_v29 = vmax.f32 %v800_v26, 0.0  ;;  %v824_v33 = vadd.f32 %v816_v27, %v1997_v3  ;;  %v1684_v3 = vld [vmem:[%s2169_s9 + $0x8] sm:$0xff]  }
 0x4e3   :  { %v818_v31 = vmul.f32 %v810_v29, %v1999_v4  ;;  %v825_v32 = vadd.f32 %v817_v28, %v1995_v63  ;;  %v1683_v63 = vld [vmem:[%s2169_s9 + $0x10] sm:$0xff]  }
 0x4e5   :  { %v826_v34 = vadd.f32 %v818_v31, %v1999_v4  ;;  %v829_v38 = vpack.c.bf16 %v825_v32, %v823_v35  ;;  %v1685_v4 = vld [vmem:[%s2169_s9] sm:$0xff]  }
 0x4e7   :  { %v830_v36 = vpack.c.bf16 %v826_v34, %v824_v33 }
 0x4e9   :  { %1023 = vmatprep.mubr.bf16.mxu0 %v830_v36 }
 0x4ea   :  { %1024 = vmatmul.mubr.bf16.vlgmr.msra.gmra.mxu0 %v829_v38 }
 0x4eb   :  { %1581 = vmatprep.mubr.msk.bf16.mxu0 %vm1711_vm1, %v1710_v1  ;;  %1574 = vmatpush3.bf16.msra.mxu0 %v1682_v39 }
 0x4ec   :  { %1575 = vmatprep.subr.bf16.mxu0 %v1710_v1 }
 0x4ef   :  { %1576 = vmatpush3.bf16.msra.mxu0 %v1683_v63  ;;  %v1521_v5 = vpop.f32.mrf.mxu1 }
 0x4f0   :  { %1577 = vmatprep.subr.bf16.mxu0 %v1710_v1 }
 0x4f1   :  { %v1522_v6 = vpop.f32.mrf.mxu1 }
 0x4f2   :  { %v1523_v49 = vadd.f32 %v1522_v6, %v1521_v5 }
 0x4f3   :  { %1578 = vmatpush3.bf16.msra.mxu0 %v1684_v3  ;;  %v1524_v7 = vpop.f32.mrf.mxu1 }
 0x4f4   :  { %1579 = vmatprep.subr.bf16.mxu0 %v1710_v1  ;;  %v1268_v1 = vsub.s32 4, %v1898_v46 }
 0x4f5   :  { %v1525_v51 = vpop.f32.mrf.mxu1 }
 0x4f6   :  { %v1526_v56 = vadd.f32 %v1525_v51, %v1524_v7  ;;  %v1269_v41 = vrot.slane %v1904_v48, %v1268_v1 }
 0x4f7   :  { %1580 = vmatpush3.bf16.msra.mxu0 %v1685_v4 }
 0x5aa   :  { %v1499_v43 = vpop.f32.mrf.mxu0 }
 0x5ac   :  { %v1500_v47 = vpop.f32.mrf.mxu0 }
 0x5ad   :  { %v1501_v50 = vadd.f32 %v1500_v47, %v1499_v43 }
 0x5ae   :  { %v1502_v52 = vpop.f32.mrf.mxu0 }
 0x5af   :  { %v1163_v53 = vadd.f32 %v1523_v49, %v1501_v50 }
 0x5b0   :  { %v1503_v55 = vpop.f32.mrf.mxu0 }
 0x5b1   :  { %v1504_v57 = vadd.f32 %v1503_v55, %v1502_v52  ;;  %v1173_v58 = vadd.f32 %v1172_v54, %v1163_v53 }
 0x5b3   :  { %v1166_v59 = vadd.f32 %v1526_v56, %v1504_v57  ;;  %v1175_v61 = vmax.f32 %v1173_v58, 0.0 }
 0x5b5   :  { %v1174_v60 = vadd.f32 %v1172_v54, %v1166_v59 }
 0x5b7   :  { %v1176_v62 = vmax.f32 %v1174_v60, 0.0 }
 0x5b9   :  { %v1185_v0 = vpack.c.bf16 %v1176_v62, %v1175_v61 }
 0x5bb   :  { %1582 = vmatmul.mubr.msk.bf16.vlgmr.msra.gmra.mxu0 %vm1214_vm8, %v1185_v0 }
 0x67b   :  { %v1252_v11 = vpop.f32.mrf.mxu0 }
 0x67c   :  { %v1253_v13 = vadd.f32 %v1252_v11, %v1189_v10 }
 0x67d   :  { %v1583_v12 = vpop.f32.mrf.mxu0 }
 0x67e   :  { %v1259_v17 = vmax.f32 %v1253_v13, 0.0 }
 0x67f   :  { %v1255_v14 = vpop.f32.mrf.mxu0 }
 0x680   :  { %v1256_v15 = vadd.f32 %v1255_v14, %v1189_v10 }
 0x681   :  { %v1584_v16 = vpop.f32.mrf.mxu0 }
 0x682   :  { %v1260_v42 = vmax.f32 %v1256_v15, 0.0 }
 0x684   :  { %v1265_v40 = vpack.c.bf16 %v1260_v42, %v1259_v17 }
 0x686   :  { %1590 = vmatmul.mubr.msk.bf16.vlgmr.msra.gmra.mxu1 %vm280_vm5, %v1265_v40 }
 0x746   :  { %v1319_v44 = vpop.f32.mrf.mxu1 }
 0x747   :  { %v1320_v18 = vadd.f32 %v1319_v44, %v1269_v41 }
 0x748   :  { %v1591_v19 = vpop.f32.mrf.mxu1 }
 0x749   :  { %1326 = vst [vmem:[#allocation2] sm:$0xff] %v1320_v18 }
 0x74a   :  { %v1322_v20 = vpop.f32.mrf.mxu1 }
 0x74b   :  { %v1323_v21 = vadd.f32 %v1322_v20, %v1269_v41 }
 0x74c   :  { %v1592_v22 = vpop.f32.mrf.mxu1 }
 0x74d   :  { %1327 = vst [vmem:[#allocation2 + $0x8] sm:$0xff] %v1323_v21 }
 0x74e   :  { %1699 = shalt.err (!%p1696_p4)
}
 0x74f   :  { %s1715_s1 = smov 128   ;;  %s1716_s15 = smov 8  }
 0x750   :  { %1339 = dma.vmem_to_hbm [thread:$0]  %s1334_s14, 256, %s2172_s12, [#allocation3], %s1715_s1, %s1715_s1, %s1716_s15  }
 0x751   :  { %1708 = dma.done.wait [#allocation3], 256  }
 0x752   :  { %1709 = vsyncadd [#allocation3], 4294967040 }
 0x753   :  { %1343 = vsyncpa [#allocation3], 1 }

</bundles_post_ra>
